<compile_context>
chip_gen: v7x
topology: tpu7x:2x2x1
jax: 0.10.0
libtpu: 0.0.40
codegen_flags: <defaults>
</compile_context>

<pallas_src>
import functools

import numpy as np
import jax
import jax.numpy as jnp
from jax import lax
from jax.experimental import pallas as pl
from jax.experimental.pallas import tpu as pltpu


def _round_up(x, m):
    return ((x + m - 1) // m) * m


@functools.lru_cache(maxsize=None)
def _vmem_budgets():
    """Generation-aware (scoped-VMEM request, tile-planning budget) in bytes."""
    try:
        cap = int(pltpu.get_tpu_info().vmem_capacity_bytes)
    except Exception:  # query unavailable -> conservative v7x-safe fallback
        cap = 64 * 1024 * 1024
    cap = max(cap, 32 * 1024 * 1024)
    limit = (cap * 3) // 4      # e.g. 96 MiB on v5e/v6e (128 MiB VMEM), 48 MiB on v7x
    budget = cap // 2           # what the tile chooser plans against (leaves headroom)
    return limit, budget


def _choose_tiles(P, Q, c4, budget, tile_p=None, tile_q=None):
    """Pick (TP output-pixel tile, TQ input-pixel chunk); lane-dense multiples of 128.
    Prefers TP >= 256 (MXU N-dim) and the largest TQ (contraction chunk) that fits."""
    p_cap = _round_up(max(P, 1), 128)
    q_cap = _round_up(max(Q, 1), 128)

    def fits(tp, tq):
        onehot = 8 * tq * tp                  # (TQ,TP) one-hot + compare temporaries
        img = 2 * c4 * tq * 2                 # double-buffered bf16 image chunk
        matres = 2 * c4 * tp * 4              # (4C,TP) f32 dot result + weighting temps
        outb = 2 * (c4 // 4) * tp * 4         # double-buffered f32 output tile
        small = 2 * 2 * 2 * tp * 4 * 2        # flow/base tiles
        return onehot + img + matres + outb + small <= budget

    tp_cands = [t for t in (2048, 1024, 512, 256) if t <= p_cap] or [p_cap]
    tq_cands = [t for t in (32768, 16384, 8192, 4096, 2048, 1024, 512, 256, 128)
                if t <= q_cap]
    if not tq_cands or tq_cands[0] != q_cap:
        tq_cands = [q_cap] + tq_cands
    if tile_p is not None:
        tp_cands = [min(tile_p, p_cap)]
    if tile_q is not None:
        tq_cands = [min(_round_up(tile_q, 128), q_cap)]

    for tp in tp_cands:
        for tq in tq_cands:
            if fits(tp, tq):
                return tp, tq
    return tp_cands[-1], tq_cands[-1]


def _base_coords_np(H, W):
    """Host-side flattened meshgrid: row 0 = x index, row 1 = y index per flat pixel."""
    bx = np.tile(np.arange(W, dtype=np.float32)[None, :], (H, 1)).reshape(-1)
    by = np.repeat(np.arange(H, dtype=np.float32), W)
    return np.stack([bx, by], axis=0)  # (2, H*W)


# ----------------------------------------------------------------------------
# Kernel 1: the sampling grid the module returns (lane-dense (2, P) layout).
# ----------------------------------------------------------------------------
def _grid_kernel(flow_ref, base_ref, grid_ref, *, H_out, W_out):
    grid_ref[0:1, :] = (flow_ref[0:1, :] + base_ref[0:1, :]) * (2.0 / (W_out - 1)) - 1.0
    grid_ref[1:2, :] = (flow_ref[1:2, :] + base_ref[1:2, :]) * (2.0 / (H_out - 1)) - 1.0


# ----------------------------------------------------------------------------
# Kernel 2: fused (flow -> grid -> bilinear grid_sample) over a 2-D grid:
#   axis 0 (parallel)  : output-pixel tiles of size TP
#   axis 1 (arbitrary) : input-pixel (contraction) chunks of size TQ, accumulated
#                        in-place in the f32 output tile.
#   flow_ref : (2, TP)  f32   flow tile (row 0 = dx, row 1 = dy)
#   base_ref : (2, TP)  f32   base pixel coordinates (row 0 = x, row 1 = y)
#   img_ref  : (4*Cp, TQ) bf16  pre-shifted image chunk (corner 00/01/10/11 slabs)
#   out_ref  : (Cp, TP) f32
# ----------------------------------------------------------------------------
def _sample_kernel(flow_ref, base_ref, img_ref, out_ref, *,
                   H_out, W_out, H_in, W_in, q_pad):
    k = pl.program_id(1)
    tq = img_ref.shape[1]
    c_pad = out_ref.shape[0]

    # ---- fused grid: flow -> normalized coords -> input pixel coords (align_corners=False)
    gx = (flow_ref[0:1, :] + base_ref[0:1, :]) * (2.0 / (W_out - 1)) - 1.0
    gy = (flow_ref[1:2, :] + base_ref[1:2, :]) * (2.0 / (H_out - 1)) - 1.0
    ix = (gx + 1.0) * (0.5 * W_in) - 0.5
    iy = (gy + 1.0) * (0.5 * H_in) - 0.5

    x0f = jnp.floor(ix)
    y0f = jnp.floor(iy)
    x0 = x0f.astype(jnp.int32)
    y0 = y0f.astype(jnp.int32)
    x1 = x0 + 1
    y1 = y0 + 1
    wx1 = ix - x0f
    wx0 = 1.0 - wx1
    wy1 = iy - y0f
    wy0 = 1.0 - wy1

    def valid(yc, xc):
        return ((xc >= 0) & (xc < W_in) & (yc >= 0) & (yc < H_in)).astype(jnp.float32)

    # Per-corner weight (bilinear x zeros-padding validity), applied AFTER the matmul
    # on the small (4C, TP) result.
    w00 = wy0 * wx0 * valid(y0, x0)
    w01 = wy0 * wx1 * valid(y0, x1)
    w10 = wy1 * wx0 * valid(y1, x0)
    w11 = wy1 * wx1 * valid(y1, x1)

    # Single one-hot for corner (y0, x0); the other three corners come from the
    # pre-shifted image slabs (img @ roll(onehot, s) == roll(img, -s, axis=1) @ onehot).
    flat00 = y0 * W_in + x0
    # Keep the matched row inside [0, q_pad): whenever any corner is in bounds,
    # flat00 >= -(W_in + 1), so one +q_pad wrap suffices; wrapped/aliased rows are
    # zeroed by the `valid` factor in the weights (cyclic image rolls match this wrap).
    flat00 = jnp.where(flat00 < 0, flat00 + q_pad, flat00)
    local = flat00 - k * tq                                  # chunk-relative row index
    q_iota = lax.broadcasted_iota(jnp.int32, (tq, 1), 0)
    onehot = jnp.where(q_iota == local, jnp.bfloat16(1.0), jnp.bfloat16(0.0))  # (TQ, TP)

    # One MXU matmul gathers all four corners for every channel: (4C, TQ) @ (TQ, TP).
    r = jnp.dot(img_ref[...], onehot, preferred_element_type=jnp.float32)

    contrib = (w00 * r[0:c_pad, :]
               + w01 * r[c_pad:2 * c_pad, :]
               + w10 * r[2 * c_pad:3 * c_pad, :]
               + w11 * r[3 * c_pad:4 * c_pad, :])

    @pl.when(k == 0)
    def _():
        out_ref[...] = jnp.zeros_like(out_ref)

    out_ref[...] += contrib


# ----------------------------------------------------------------------------
# Wrapper (host-side glue: grouping, padding, pre-shifting, reshapes).
# ----------------------------------------------------------------------------
def stn_flow_relative(flow, apply=None, padding="zeros", tile_p=None, tile_q=None):
    """Pallas-TPU forward pass of STN_Flow_relative.

    flow : (1, 2, H, W) float32; `apply`: optional list of (1, C, H_in, W_in) images.
    Returns ([registered images ...], grid) with grid of shape (1, H, W, 2).
    """
    assert padding == "zeros", "only padding_mode='zeros' implemented"
    N, two, H, W = flow.shape
    assert N == 1 and two == 2, "module semantics require flow of shape (1, 2, H, W)"
    assert H > 1 and W > 1, "grid normalization divides by (H-1), (W-1)"
    for t in (tile_p, tile_q):
        if t is not None:
            assert t > 0 and t % 128 == 0, "tiles must be positive multiples of 128"

    vmem_limit, budget = _vmem_budgets()
    flow = flow.astype(jnp.float32)
    P = H * W
    flow_flat = flow.reshape(2, P)
    base_flat = jnp.asarray(_base_coords_np(H, W))  # (2, P)

    def padded(mult):
        p_pad = _round_up(P, mult)
        if p_pad == P:
            return flow_flat, base_flat, p_pad
        pad = ((0, 0), (0, p_pad - P))
        return jnp.pad(flow_flat, pad), jnp.pad(base_flat, pad), p_pad

    # ---------------- returned sampling grid: one large lane-dense block ----------------
    tg = min(_round_up(P, 128), 131072)       # single block for all but enormous images
    flow_g, base_g, p_pad_g = padded(tg)
    grid_flat = pl.pallas_call(
        functools.partial(_grid_kernel, H_out=H, W_out=W),
        out_shape=jax.ShapeDtypeStruct((2, p_pad_g), jnp.float32),
        grid=(p_pad_g // tg,),
        in_specs=[pl.BlockSpec((2, tg), lambda i: (0, i)),
                  pl.BlockSpec((2, tg), lambda i: (0, i))],
        out_specs=pl.BlockSpec((2, tg), lambda i: (0, i)),
        compiler_params=pltpu.CompilerParams(
            dimension_semantics=("parallel",),
            vmem_limit_bytes=vmem_limit),
    )(flow_g, base_g)
    grid = grid_flat[:, :P].reshape(2, H, W).transpose(1, 2, 0)[None]  # (1, H, W, 2)

    registered = []
    if apply:
        # Group applied images by input spatial size so one matmul serves all channels.
        groups = {}
        for idx, img in enumerate(apply):
            n, c, hi, wi = img.shape
            assert n == 1, "module semantics require batch size 1"
            groups.setdefault((int(hi), int(wi)), []).append(idx)

        results = [None] * len(apply)
        for (hi, wi), idxs in groups.items():
            chans = [int(apply[i].shape[1]) for i in idxs]
            c_tot = sum(chans)
            c_pad = _round_up(c_tot, 8)        # sublane-aligned corner slabs in-kernel
            c4 = 4 * c_pad
            q = hi * wi

            tp, tq = _choose_tiles(P, q, c4, budget, tile_p=tile_p, tile_q=tile_q)
            q_pad = _round_up(q, tq)
            flow_p, base_p, p_pad = padded(tp)

            # Flatten, concat channels, zero-pad, then pre-shift along Q by the four
            # bilinear corner offsets (cyclic, modulus q_pad) and stack into a
            # (4*c_pad, q_pad) bf16 LHS: one matmul gathers all four corners.
            imgs_flat = [apply[i].astype(jnp.float32).reshape(-1, q) for i in idxs]
            img_cat = imgs_flat[0] if len(imgs_flat) == 1 else jnp.concatenate(imgs_flat, 0)
            img_cat = jnp.pad(img_cat, ((0, c_pad - c_tot), (0, q_pad - q)))
            img4 = jnp.concatenate(
                [jnp.roll(img_cat, -s, axis=1) for s in (0, 1, wi, wi + 1)], axis=0)
            img4 = img4.astype(jnp.bfloat16)

            kernel = functools.partial(
                _sample_kernel, H_out=H, W_out=W, H_in=hi, W_in=wi, q_pad=q_pad)
            out_flat = pl.pallas_call(
                kernel,
                out_shape=jax.ShapeDtypeStruct((c_pad, p_pad), jnp.float32),
                grid=(p_pad // tp, q_pad // tq),
                in_specs=[pl.BlockSpec((2, tp), lambda i, k: (0, i)),
                          pl.BlockSpec((2, tp), lambda i, k: (0, i)),
                          pl.BlockSpec((c4, tq), lambda i, k: (0, k))],
                out_specs=pl.BlockSpec((c_pad, tp), lambda i, k: (0, i)),
                compiler_params=pltpu.CompilerParams(
                    dimension_semantics=("parallel", "arbitrary"),
                    vmem_limit_bytes=vmem_limit),
            )(flow_p, base_p, img4)

            out_flat = out_flat[:c_tot, :P]
            off = 0
            for i, c in zip(idxs, chans):
                results[i] = out_flat[off:off + c].reshape(1, c, H, W)
                off += c
        registered = results

    return registered, grid


# ----------------------------------------------------------------------------
# Pure numpy reference of F.grid_sample(bilinear, zeros, align_corners=False),
# mirroring the kernel's f32 coordinate arithmetic.
# ----------------------------------------------------------------------------
def _ref_grid_sample_zeros(img, grid):
    _, C, H_in, W_in = img.shape
    gx = grid[0, :, :, 0].astype(np.float32)
    gy = grid[0, :, :, 1].astype(np.float32)
    ix = (gx + np.float32(1.0)) * np.float32(0.5 * W_in) - np.float32(0.5)
    iy = (gy + np.float32(1.0)) * np.float32(0.5 * H_in) - np.float32(0.5)
    x0 = np.floor(ix).astype(np.int32)
    y0 = np.floor(iy).astype(np.int32)
    x1 = x0 + 1
    y1 = y0 + 1
    wx1 = ix - x0.astype(np.float32)
    wx0 = np.float32(1.0) - wx1
    wy1 = iy - y0.astype(np.float32)
    wy0 = np.float32(1.0) - wy1
    H_out, W_out = gx.shape
    out = np.zeros((1, C, H_out, W_out), np.float32)
    for yc, xc, w in [(y0, x0, wy0 * wx0), (y0, x1, wy0 * wx1),
                      (y1, x0, wy1 * wx0), (y1, x1, wy1 * wx1)]:
        valid = (xc >= 0) & (xc < W_in) & (yc >= 0) & (yc < H_in)
        ys = np.clip(yc, 0, H_in - 1)
        xs = np.clip(xc, 0, W_in - 1)
        vals = img[0][:, ys, xs]  # (C, H_out, W_out)
        out[0] += vals * (w * valid)[None].astype(np.float32)
    return out


if __name__ == "__main__":
    key = jax.random.PRNGKey(0)
    k1, k2, k3, k4 = jax.random.split(key, 4)
    H, W = 16, 16

    flow = jax.random.normal(k1, (1, 2, H, W), jnp.float32) * 3.0   # includes OOB samples
    img_a = jax.random.normal(k2, (1, 4, H, W), jnp.float32)        # same size as flow
    img_b = jax.random.normal(k3, (1, 3, H, W), jnp.float32)        # channel-batched with img_a
    img_c = jax.random.normal(k4, (1, 2, 8, 24), jnp.float32)       # different input size
    apply_list = [img_a, img_b, img_c]

    # auto-sized tiles
    registered, grid = stn_flow_relative(flow, apply=apply_list)
    jax.block_until_ready(grid)
    for r in registered:
        jax.block_until_ready(r)

    # forced small tiles: exercises P tiling, the Q-chunk accumulator and q/c padding
    registered_t, grid_t = stn_flow_relative(flow, apply=apply_list, tile_p=128, tile_q=128)
    jax.block_until_ready(grid_t)
    for r in registered_t:
        jax.block_until_ready(r)

    # ---- correctness: grid vs numpy (same f32 arithmetic as the kernel) ----
    flow_np = np.asarray(flow)
    xv, yv = np.meshgrid(np.arange(W, dtype=np.float32), np.arange(H, dtype=np.float32))
    gx_ref = (flow_np[:, 0] + xv[None]) * np.float32(2.0 / (W - 1)) - np.float32(1.0)
    gy_ref = (flow_np[:, 1] + yv[None]) * np.float32(2.0 / (H - 1)) - np.float32(1.0)
    grid_ref = np.stack([gx_ref, gy_ref], axis=-1)  # (1, H, W, 2)

    assert np.allclose(np.asarray(grid), grid_ref, atol=1e-5), "grid mismatch"
    assert np.allclose(np.asarray(grid_t), grid_ref, atol=1e-5), "grid mismatch (tiled)"

    # ---- correctness: grid_sample vs numpy reference (kernel image is bf16) ----
    grid_np = np.asarray(grid)
    for out, out_t, img in zip(registered, registered_t, apply_list):
        ref = _ref_grid_sample_zeros(np.asarray(img), grid_np)
        assert np.allclose(np.asarray(out), ref, atol=2e-2, rtol=2e-2), "grid_sample mismatch"
        assert np.allclose(np.asarray(out_t), ref, atol=2e-2, rtol=2e-2), "grid_sample mismatch (tiled)"

    print("KERNEL_OK")
</pallas_src>

<mosaic_0001>
module attributes {stable_mosaic.version = 11 : i64} {
  func.func @_grid_kernel(%arg0: i32, %arg1: memref<2x256xf32, #tpu.memory_space<vmem>>, %arg2: memref<2x256xf32, #tpu.memory_space<vmem>>, %arg3: memref<2x256xf32, #tpu.memory_space<vmem>>) attributes {dimension_semantics = [#tpu.dimension_semantics<parallel>], iteration_bounds = array<i64: 1>, scalar_prefetch = 0 : i64, scratch_operands = 0 : i64, tpu.core_type = #tpu.core_type<tc>, window_params = [{transform_indices = @transform_0, window_bounds = array<i64: 2, 256>}, {transform_indices = @transform_1, window_bounds = array<i64: 2, 256>}, {transform_indices = @transform_2, window_bounds = array<i64: 2, 256>}]} {
    %c0 = arith.constant 0 : index
    %c0_0 = arith.constant 0 : index
    %0 = vector.load %arg1[%c0, %c0_0] : memref<2x256xf32, #tpu.memory_space<vmem>>, vector<1x256xf32>
    %c0_1 = arith.constant 0 : index
    %c0_2 = arith.constant 0 : index
    %1 = vector.load %arg2[%c0_1, %c0_2] : memref<2x256xf32, #tpu.memory_space<vmem>>, vector<1x256xf32>
    %2 = arith.addf %0, %1 : vector<1x256xf32>
    %cst = arith.constant 0.13333334 : f32
    %3 = vector.broadcast %cst : f32 to vector<1x256xf32>
    %4 = arith.mulf %2, %3 : vector<1x256xf32>
    %cst_3 = arith.constant 1.000000e+00 : f32
    %5 = vector.broadcast %cst_3 : f32 to vector<1x256xf32>
    %6 = arith.subf %4, %5 : vector<1x256xf32>
    %c0_4 = arith.constant 0 : index
    %c0_5 = arith.constant 0 : index
    %7 = vector.load %arg3[%c0_4, %c0_5] : memref<2x256xf32, #tpu.memory_space<vmem>>, vector<1x256xf32>
    tpu.vector_store %arg3[%c0_4, %c0_5], %6 {strides = array<i32>} : memref<2x256xf32, #tpu.memory_space<vmem>>, vector<1x256xf32>,
    %c1 = arith.constant 1 : index
    %c0_6 = arith.constant 0 : index
    %8 = vector.load %arg1[%c1, %c0_6] : memref<2x256xf32, #tpu.memory_space<vmem>>, vector<1x256xf32>
    %c1_7 = arith.constant 1 : index
    %c0_8 = arith.constant 0 : index
    %9 = vector.load %arg2[%c1_7, %c0_8] : memref<2x256xf32, #tpu.memory_space<vmem>>, vector<1x256xf32>
    %10 = arith.addf %8, %9 : vector<1x256xf32>
    %cst_9 = arith.constant 0.13333334 : f32
    %11 = vector.broadcast %cst_9 : f32 to vector<1x256xf32>
    %12 = arith.mulf %10, %11 : vector<1x256xf32>
    %cst_10 = arith.constant 1.000000e+00 : f32
    %13 = vector.broadcast %cst_10 : f32 to vector<1x256xf32>
    %14 = arith.subf %12, %13 : vector<1x256xf32>
    %c1_11 = arith.constant 1 : index
    %c0_12 = arith.constant 0 : index
    %15 = vector.load %arg3[%c1_11, %c0_12] : memref<2x256xf32, #tpu.memory_space<vmem>>, vector<1x256xf32>
    tpu.vector_store %arg3[%c1_11, %c0_12], %14 {strides = array<i32>} : memref<2x256xf32, #tpu.memory_space<vmem>>, vector<1x256xf32>,
    return
  }
  func.func @transform_0(%arg0: i32) -> (i32, i32) {
    %c0_i32 = arith.constant 0 : i32
    %c0_i32_0 = arith.constant 0 : i32
    return %c0_i32, %arg0 : i32, i32
  }
  func.func @transform_1(%arg0: i32) -> (i32, i32) {
    %c0_i32 = arith.constant 0 : i32
    %c0_i32_0 = arith.constant 0 : i32
    return %c0_i32, %arg0 : i32, i32
  }
  func.func @transform_2(%arg0: i32) -> (i32, i32) {
    %c0_i32 = arith.constant 0 : i32
    %c0_i32_0 = arith.constant 0 : i32
    return %c0_i32, %arg0 : i32, i32
  }
}

</mosaic_0001>

<bundles_post_ra>
// kernel: tpu_custom_call.1
= control target key start
LH: loop header
LB: loop body
LE: loop exit
PB: predicated region body
PF: predicated region fallthrough
CT: control target
= control target key end

     0   :  { %7 = vsyncpa [#allocation3], 0  ;;  %s202_s0 = inlined_call_operand.hbm [shape: f32[2,256], index: 0, kind: input, shape index: {}]   ;;  %s203_s1 = inlined_call_operand.hbm [shape: f32[2,256], index: 1, kind: input, shape index: {}]   ;;  %s204_s2 = inlined_call_operand.hbm [shape: f32[2,256], index: 2, kind: output, shape index: {}]  }
   0x1   :  { %8 = vsyncpa [#allocation6], 0 }
   0x2   :  { %9 = vsyncpa [#allocation4], 0  ;;  %s148_s9 = smov [#allocation2]   ;;  %s149_s11 = smov [#allocation5]  }
   0x3   :  { %s16_s10 = sshll.u32 %s148_s9, 4  ;;  %s26_s12 = sshll.u32 %s149_s11, 4  ;;  %s17_s10 = int_to_ptr.vmem [resolvable:$true] %s16_s10  ;;  %s27_s12 = int_to_ptr.vmem [resolvable:$true] %s26_s12 }
   0x4   :  { %s76_s15 = scalar_lea.hbm %s202_s0, 64 }
   0x5   :  { %p77_p0 = scmp.ne.s32.totalorder %s202_s0, %s76_s15  ;;  %p80_p1 = scmp.lt.u32.totalorder %s76_s15, %s202_s0 }
   0x7   :  { %p82_p2 = pnand %p80_p1, %p77_p0 }
   0x9   :  { %85 = shalt.err (!%p82_p2)
}
   0xa   :  { %s86_s20 = scalar_lea.vmem %s17_s10, 64  ;;  %p91_p4 = scmp.lt.s32.totalorder %s17_s10, %s17_s10 }
   0xb   :  { %p87_p3 = scmp.ne.s32.totalorder %s17_s10, %s86_s20  ;;  %p92_p5 = scmp.lt.s32.totalorder %s86_s20, %s86_s20 }
   0xd   :  { %p93_p6 = por %p92_p5, %p91_p4 }
   0xf   :  { %p94_p7 = pnand %p93_p6, %p87_p3 }
  0x11   :  { %97 = shalt.err (!%p94_p7)
}
  0x12   :  { %19 = dma.hbm_to_vmem [thread:$0]  %s202_s0, 64, %s17_s10, [#allocation3]  }
  0x13   :  { %s98_s25 = scalar_lea.hbm %s203_s1, 64 }
  0x14   :  { %p99_p8 = scmp.ne.s32.totalorder %s203_s1, %s98_s25  ;;  %p102_p9 = scmp.lt.u32.totalorder %s98_s25, %s203_s1 }
  0x16   :  { %p104_p10 = pnand %p102_p9, %p99_p8 }
  0x18   :  { %107 = shalt.err (!%p104_p10)
}
  0x19   :  { %s108_s30 = scalar_lea.vmem %s27_s12, 64  ;;  %p113_p12 = scmp.lt.s32.totalorder %s27_s12, %s27_s12 }
  0x1a   :  { %p109_p11 = scmp.ne.s32.totalorder %s27_s12, %s108_s30  ;;  %p114_p13 = scmp.lt.s32.totalorder %s108_s30, %s108_s30 }
  0x1c   :  { %p115_p0 = por %p114_p13, %p113_p12 }
  0x1e   :  { %p116_p1 = pnand %p115_p0, %p109_p11 }
  0x20   :  { %119 = shalt.err (!%p116_p1)
}
  0x21   :  { %29 = dma.hbm_to_vmem [thread:$0]  %s203_s1, 64, %s27_s12, [#allocation6]  }
  0x22   :  { %142 = dma.done.wait [#allocation3], 64  }
  0x23   :  { %143 = vsyncadd [#allocation3], 4294967232 }
  0x24   :  { %144 = dma.done.wait [#allocation6], 64  }
  0x25   :  { %145 = vsyncadd [#allocation6], 4294967232  ;;  %v36_v0 = vld [vmem:[#allocation2] ss:$2 sm:$0x3]  ;;  %v41_v2 = vlaneseq  ;;  %s150_s4 = smov [#allocation7]  }
  0x26   :  { %v37_v1 = vld [vmem:[#allocation5] ss:$2 sm:$0x3]  ;;  %v47_v4 = vld [vmem:[#allocation2 + $0x1] ss:$2 sm:$0x3] }
  0x27   :  { %v38_v3 = vadd.f32 %v37_v1, %v36_v0  ;;  %v49_v5 = vld [vmem:[#allocation5 + $0x1] ss:$2 sm:$0x3]  ;;  %s61_s5 = sshll.u32 %s150_s4, 4  ;;  %vm43_vm0 = vcmp.lt.s32.totalorder %v41_v2, 256  ;;  %s62_s5 = int_to_ptr.vmem [resolvable:$true] %s61_s5 }
  0x28   :  { %v50_v6 = vadd.f32 %v49_v5, %v47_v4  ;;  %s120_s1 = scalar_lea.vmem %s62_s5, 64  ;;  %p125_p3 = scmp.lt.s32.totalorder %s62_s5, %s62_s5 }
  0x29   :  { %v39_v7 = vmul.f32 0.13333334, %v38_v3  ;;  %p121_p2 = scmp.ne.s32.totalorder %s62_s5, %s120_s1  ;;  %p126_p4 = scmp.lt.s32.totalorder %s120_s1, %s120_s1 }
  0x2a   :  { %v51_v8 = vmul.f32 0.13333334, %v50_v6 }
  0x2b   :  { %v71_v9 = vadd.f32 -1.0, %v39_v7  ;;  %p127_p5 = por %p126_p4, %p125_p3 }
  0x2c   :  { %v72_v10 = vadd.f32 -1.0, %v51_v8 }
  0x2d   :  { %45 = vst.msk [vmem:[#allocation7] ss:$2 sm:$0x3] %vm43_vm0, %v71_v9  ;;  %p128_p6 = pnand %p127_p5, %p121_p2 }
  0x2e   :  { %54 = vst.msk [vmem:[#allocation7 + $0x1] ss:$2 sm:$0x3] %vm43_vm0, %v72_v10 }
  0x2f   :  { %131 = shalt.err (!%p128_p6)
}
  0x30   :  { %s132_s8 = scalar_lea.hbm %s204_s2, 64 }
  0x31   :  { %p133_p7 = scmp.ne.s32.totalorder %s204_s2, %s132_s8  ;;  %p136_p8 = scmp.lt.u32.totalorder %s132_s8, %s204_s2 }
  0x33   :  { %p138_p9 = pnand %p136_p8, %p133_p7 }
  0x35   :  { %141 = shalt.err (!%p138_p9)
}
  0x36   :  { %64 = dma.vmem_to_hbm [thread:$0]  %s62_s5, 64, %s204_s2, [#allocation4]  }
  0x37   :  { %146 = dma.done.wait [#allocation4], 64  }
  0x38   :  { %147 = vsyncadd [#allocation4], 4294967232 }
  0x39   :  { %68 = vsyncpa [#allocation3], 1 }
  0x3a   :  { %69 = vsyncpa [#allocation6], 1 }
  0x3b   :  { %70 = vsyncpa [#allocation4], 1 }

</bundles_post_ra>
